<compile_context>
chip_gen: v7x
topology: tpu7x:2x2x1
jax: 0.10.0
libtpu: 0.0.40
codegen_flags: <defaults>
</compile_context>

<pallas_src>
import jax
import jax.numpy as jnp
from jax.experimental import pallas as pl
from jax.experimental.pallas import tpu as pltpu


def _round_up(x, m):
    return (x + m - 1) // m * m


def _cdiv(a, b):
    return -(-a // b)


# ---------------------------------------------------------------------------
# Pallas kernel: out = ReLU( gathered_tile @ W_folded + shift )
# grid = (n_tiles,)  -- single parallel axis over row tiles.
# ---------------------------------------------------------------------------
def conv_bn_relu_kernel(g_ref, w_ref, shift_ref, o_ref):
    acc = jnp.dot(g_ref[...], w_ref[...], preferred_element_type=jnp.float32)
    o_ref[...] = jnp.maximum(acc + shift_ref[...], 0.0).astype(o_ref.dtype)


# ---------------------------------------------------------------------------
# Kernel map (stride=1): for each point and each of the K offsets, the index of
# the neighboring point, or the sentinel index N (zero feature row) if missing.
# Sort + searchsorted over linearized coordinates: O(N K log N).
# ---------------------------------------------------------------------------
def build_kernel_map(coords, ks, dilation, num_extra_taps=0):
    """coords: [N, 3] int32 unique voxel coords.
    Returns nbr [N, K + num_extra_taps] int32; missing/pad taps -> sentinel N."""
    N = coords.shape[0]
    r = ks // 2
    ax = jnp.arange(-r, r + 1, dtype=jnp.int32)
    offs = jnp.stack(jnp.meshgrid(ax, ax, ax, indexing="ij"), axis=-1)
    offs = offs.reshape(-1, 3) * jnp.int32(dilation)                 # [K, 3]

    cmin = coords.min(axis=0)
    ext = coords.max(axis=0) - cmin + 1                              # [3]
    # TODO(synk): int32 linearization overflows for bounding boxes > 2^31 voxels.
    strides = jnp.stack([ext[1] * ext[2], ext[2], jnp.int32(1)])     # [3]

    keys = ((coords - cmin) * strides).sum(-1)                       # [N]
    order = jnp.argsort(keys).astype(jnp.int32)
    skeys = keys[order]

    tgt = coords[:, None, :] + offs[None, :, :]                      # [N, K, 3]
    rel = tgt - cmin
    inb = ((rel >= 0) & (rel < ext)).all(-1)                         # [N, K]
    tkeys = jnp.where(inb, (rel * strides).sum(-1), -1)              # [N, K]

    pos = jnp.searchsorted(skeys, tkeys)
    pos_c = jnp.minimum(pos, N - 1)
    hit = inb & (skeys[pos_c] == tkeys)
    nbr = jnp.where(hit, order[pos_c], N).astype(jnp.int32)          # [N, K]

    if num_extra_taps:
        pad = jnp.full((N, num_extra_taps), N, jnp.int32)
        nbr = jnp.concatenate([nbr, pad], axis=1)
    return nbr


# ---------------------------------------------------------------------------
# BasicConvolutionBlock forward: Conv3d(stride=1) + BatchNorm(inference) + ReLU.
# feats: [N, Cin] f32, coords: [N, 3] int32, weights: [K, Cin, Cout] f32.
# ---------------------------------------------------------------------------
def basic_convolution_block(feats, coords, weights, gamma, beta, mean, var,
                            *, ks=3, dilation=1, eps=1e-5, tn_max=512,
                            compute_dtype=jnp.bfloat16):
    N, Cin = feats.shape
    K, _, Cout = weights.shape
    KC = K * Cin

    # Contraction padding: add sentinel taps (they gather the zero row) only if
    # that lands exactly on a 128-lane boundary; otherwise keep the unpadded
    # (full-dim) contraction so no extra bytes are read.
    KCp = _round_up(KC, 128)
    extra = KCp - KC
    if extra % Cin == 0:
        k_extra = extra // Cin
    else:
        k_extra = 0
        KCp = KC
    Kp = K + k_extra

    # Row tiling: bounded padding (Np close to N), >=2 tiles so v7x can shard
    # the parallel axis across both TensorCores, tn multiple of 16 for bf16.
    n_tiles = max(_cdiv(N, tn_max), 2 if N >= 64 else 1)
    tn = _round_up(_cdiv(N, n_tiles), 16)
    Np = tn * n_tiles

    # Kernel map with sentinel index N; pad rows also point at the sentinel.
    nbr = build_kernel_map(coords, ks, dilation, num_extra_taps=k_extra)  # [N, Kp]
    nbr = jnp.concatenate(
        [nbr, jnp.full((Np - N, Kp), N, jnp.int32)], axis=0)              # [Np, Kp]

    # Gather directly into the padded compute-dtype layout: single pass over
    # the big slab, no where-mask, no separate zero-pad copy.
    feats_pad = jnp.concatenate(
        [feats.astype(compute_dtype), jnp.zeros((1, Cin), compute_dtype)], axis=0)
    gathered = jnp.take(feats_pad, nbr, axis=0).reshape(Np, KCp)          # [Np, KCp]
    # TODO(synk): the remaining K-fold HBM read amplification of feats could be
    # removed by gathering inside the kernel (feats VMEM-resident or DMA gather
    # driven by scalar-prefetched nbr indices); kept host-side (XLA gather) for
    # lowering robustness.

    # Inference BatchNorm folded: scale into the weights, shift as a bias.
    inv_std = 1.0 / jnp.sqrt(var + eps)
    scale = gamma * inv_std                                               # [Cout]
    shift = beta - mean * scale                                           # [Cout]
    Cp = _round_up(Cout, 128)
    w = jnp.zeros((KCp, Cp), compute_dtype).at[:KC, :Cout].set(
        (weights.reshape(KC, Cout) * scale[None, :]).astype(compute_dtype))
    s = jnp.zeros((1, Cp), jnp.float32).at[0, :Cout].set(
        shift.astype(jnp.float32))

    out = pl.pallas_call(
        conv_bn_relu_kernel,
        out_shape=jax.ShapeDtypeStruct((Np, Cp), jnp.float32),
        grid_spec=pl.GridSpec(
            grid=(n_tiles,),
            in_specs=[
                pl.BlockSpec((tn, KCp), lambda i: (i, 0)),    # activation tiles
                pl.BlockSpec((KCp, Cp), lambda i: (0, 0)),    # weights: VMEM-resident
                pl.BlockSpec((1, Cp), lambda i: (0, 0)),      # BN shift
            ],
            out_specs=pl.BlockSpec((tn, Cp), lambda i: (i, 0)),
        ),
        compiler_params=pltpu.CompilerParams(
            dimension_semantics=("parallel",),                # shards tiles across TCs on v7x
        ),
    )(gathered, w, s)

    # TODO(synk): if the downstream block consumes the same padded [Np, Cp]
    # layout, return `out` directly and skip this extra HBM copy.
    return out[:N, :Cout]


# ---------------------------------------------------------------------------
# Pure-JAX f32 reference for correctness checking.
# ---------------------------------------------------------------------------
def reference(feats, coords, weights, gamma, beta, mean, var,
              *, ks=3, dilation=1, eps=1e-5):
    N, Cin = feats.shape
    nbr = build_kernel_map(coords, ks, dilation)                     # [N, K]
    feats_pad = jnp.concatenate([feats, jnp.zeros((1, Cin), feats.dtype)], 0)
    gathered = feats_pad[nbr]                                        # [N, K, Cin]
    conv = jnp.einsum("nki,kio->no", gathered, weights)
    bn = (conv - mean) / jnp.sqrt(var + eps) * gamma + beta
    return jnp.maximum(bn, 0.0)


if __name__ == "__main__":
    key = jax.random.PRNGKey(0)
    k_perm, k_feat, k_w = jax.random.split(key, 3)

    # Small synthetic sparse voxel cloud.
    N, Cin, Cout, ks, dilation = 128, 4, 8, 3, 1
    grid_size = 8  # voxel coordinates in [0, 8)^3

    # Unique coords: permutation of the dense 8^3 grid, keep first N.
    all_idx = jax.random.permutation(k_perm, grid_size ** 3)[:N]
    coords = jnp.stack(
        [all_idx // (grid_size * grid_size),
         (all_idx // grid_size) % grid_size,
         all_idx % grid_size], axis=-1).astype(jnp.int32)            # [N, 3]

    feats = jax.random.normal(k_feat, (N, Cin), dtype=jnp.float32)

    # Deterministic synthetic parameters (no checkpoint load).
    K = ks ** 3
    weights = 0.05 * jax.random.normal(k_w, (K, Cin, Cout), dtype=jnp.float32)
    gamma = 1.0 + 0.1 * jnp.arange(Cout, dtype=jnp.float32)
    beta = 0.05 * jnp.arange(Cout, dtype=jnp.float32)
    run_mean = 0.01 * jnp.arange(Cout, dtype=jnp.float32)
    run_var = 1.0 + 0.02 * jnp.arange(Cout, dtype=jnp.float32)
    # TODO(synk): BatchNorm uses fixed (inference) running stats; training-mode
    # batch-statistics update is not reproduced here.

    ref = reference(feats, coords, weights, gamma, beta, run_mean, run_var,
                    ks=ks, dilation=dilation)

    # bf16 compute path (performance default): loose tolerance vs f32 reference.
    out_bf16 = basic_convolution_block(
        feats, coords, weights, gamma, beta, run_mean, run_var,
        ks=ks, dilation=dilation, compute_dtype=jnp.bfloat16)
    out_bf16 = jax.block_until_ready(out_bf16)
    assert out_bf16.shape == (N, Cout)
    assert jnp.allclose(out_bf16, ref, atol=2e-2, rtol=2e-2)

    # f32 compute path: tight check against the reference.
    out_f32 = basic_convolution_block(
        feats, coords, weights, gamma, beta, run_mean, run_var,
        ks=ks, dilation=dilation, compute_dtype=jnp.float32)
    out_f32 = jax.block_until_ready(out_f32)
    assert jnp.allclose(out_f32, ref, atol=1e-5, rtol=1e-5)

    print("KERNEL_OK")
</pallas_src>

<mosaic_0001>
module attributes {stable_mosaic.version = 11 : i64} {
  func.func @conv_bn_relu_kernel(%arg0: i32, %arg1: memref<64x128xbf16, #tpu.memory_space<vmem>>, %arg2: memref<128x128xbf16, #tpu.memory_space<vmem>>, %arg3: memref<1x128xf32, #tpu.memory_space<vmem>>, %arg4: memref<64x128xf32, #tpu.memory_space<vmem>>) attributes {dimension_semantics = [#tpu.dimension_semantics<parallel>], iteration_bounds = array<i64: 2>, scalar_prefetch = 0 : i64, scratch_operands = 0 : i64, tpu.core_type = #tpu.core_type<tc>, window_params = [{transform_indices = @transform_0, window_bounds = array<i64: 64, 128>}, {pipeline_mode = #tpu.pipeline_mode<synchronous>, transform_indices = @transform_1, window_bounds = array<i64: 128, 128>}, {pipeline_mode = #tpu.pipeline_mode<synchronous>, transform_indices = @transform_2, window_bounds = array<i64: 1, 128>}, {transform_indices = @transform_3, window_bounds = array<i64: 64, 128>}]} {
    %c0 = arith.constant 0 : index
    %c0_0 = arith.constant 0 : index
    %0 = vector.load %arg1[%c0, %c0_0] : memref<64x128xbf16, #tpu.memory_space<vmem>>, vector<64x128xbf16>
    %c0_1 = arith.constant 0 : index
    %c0_2 = arith.constant 0 : index
    %1 = vector.load %arg2[%c0_1, %c0_2] : memref<128x128xbf16, #tpu.memory_space<vmem>>, vector<128x128xbf16>
    %cst = arith.constant dense<0.000000e+00> : vector<64x128xf32>
    %2 = tpu.matmul %0, %1, %cst {dimension_numbers = #tpu.dot_dimension_numbers<[1], [0], [0], [1], [0, 0, 1, 1], [], []>} : vector<64x128xbf16>, vector<128x128xbf16>, vector<64x128xf32> -> vector<64x128xf32>
    %c0_3 = arith.constant 0 : index
    %c0_4 = arith.constant 0 : index
    %3 = vector.load %arg3[%c0_3, %c0_4] : memref<1x128xf32, #tpu.memory_space<vmem>>, vector<1x128xf32>
    %4 = vector.broadcast %3 : vector<1x128xf32> to vector<64x128xf32>
    %5 = arith.addf %2, %4 : vector<64x128xf32>
    %cst_5 = arith.constant 0.000000e+00 : f32
    %6 = vector.broadcast %cst_5 : f32 to vector<64x128xf32>
    %7 = arith.maximumf %5, %6 : vector<64x128xf32>
    %c0_6 = arith.constant 0 : index
    %c0_7 = arith.constant 0 : index
    %8 = vector.load %arg4[%c0_6, %c0_7] : memref<64x128xf32, #tpu.memory_space<vmem>>, vector<64x128xf32>
    tpu.vector_store %arg4[%c0_6, %c0_7], %7 {strides = array<i32>} : memref<64x128xf32, #tpu.memory_space<vmem>>, vector<64x128xf32>,
    return
  }
  func.func @transform_0(%arg0: i32) -> (i32, i32) {
    %c0_i32 = arith.constant 0 : i32
    %c0_i32_0 = arith.constant 0 : i32
    return %arg0, %c0_i32 : i32, i32
  }
  func.func @transform_1(%arg0: i32) -> (i32, i32) {
    %c0_i32 = arith.constant 0 : i32
    %c0_i32_0 = arith.constant 0 : i32
    %c0_i32_1 = arith.constant 0 : i32
    return %c0_i32, %c0_i32_0 : i32, i32
  }
  func.func @transform_2(%arg0: i32) -> (i32, i32) {
    %c0_i32 = arith.constant 0 : i32
    %c0_i32_0 = arith.constant 0 : i32
    %c0_i32_1 = arith.constant 0 : i32
    return %c0_i32, %c0_i32_0 : i32, i32
  }
  func.func @transform_3(%arg0: i32) -> (i32, i32) {
    %c0_i32 = arith.constant 0 : i32
    %c0_i32_0 = arith.constant 0 : i32
    return %arg0, %c0_i32 : i32, i32
  }
}

</mosaic_0001>

<bundles_post_ra>
// kernel: tpu_custom_call.1
= control target key start
LH: loop header
LB: loop body
LE: loop exit
PB: predicated region body
PF: predicated region fallthrough
CT: control target
= control target key end

     0   :  { %8 = vsyncpa [#allocation3], 0  ;;  %s1029_s0 = inlined_call_operand.hbm [shape: bf16[128,128], index: 0, kind: input, shape index: {}]   ;;  %s1030_s1 = inlined_call_operand.hbm [shape: bf16[128,128], index: 1, kind: input, shape index: {}]   ;;  %s1031_s2 = inlined_call_operand.vmem [shape: f32[1,128], index: 2, kind: input, shape index: {}]   ;;  %s1032_s3 = inlined_call_operand.hbm [shape: f32[128,128], index: 3, kind: output, shape index: {}]  }
   0x1   :  { %10 = vsyncpa [#allocation3 + $0x1], 0 }
   0x2   :  { %11 = vsyncpa [#allocation6], 0 }
   0x3   :  { %12 = vsyncpa [#allocation4], 0 }
   0x4   :  { %14 = vsyncpa [#allocation4 + $0x1], 0  ;;  %s801_s12 = smov 0   ;;  %s803_s13 = smov 0  }
   0x5   :  { %s805_s14 = smov 0   ;;  %s807_s15 = smov 0  }
   0x6 LB: > { %s822_s16 = sadd.s32 4294967295, %s772_s15   ;;  %s488_s17 = sadd.s32 4294967294, %s772_s15   ;;  %s772_s15 = sphi %s807_s15, %s1052_s15   ;;  %s768_s14 = sphi %s805_s14, %s1051_s14   ;;  %s764_s13 = sphi %s803_s13, %s1050_s13   ;;  %s760_s12 = sphi %s801_s12, %s1049_s12  }
   0x7   : > { %p40_p0 = scmp.ne.s32.totalorder %s764_s13, %s760_s12  ;;  %p1033_p1 = scmp.eq.s32.totalorder %s822_s16, 0 }
   0x8   : > { %p112_p3 = scmp.eq.s32.totalorder %s488_s17, 1  ;;  %p489_p5 = scmp.ge.s32.totalorder %s772_s15, 1 }
   0x9   : > { %p831_p4 = por %p1033_p1, %p40_p0  ;;  %p119_p7 = scmp.lt.s32.totalorder %s772_s15, 3 }
   0xa   : > { %p836_p6 = por %p112_p3, %p40_p0  ;;  %s774_s21 = smov [#allocation5]  }
   0xb   : > { %s1036_s18 = scalar_select %p831_p4, 1, 0 }
   0xc   : > { %s1037_s19 = scalar_select %p836_p6, 1, 0 }
   0xd   : > { %p841_p8 = pnand %p489_p5, %p119_p7  ;;  %s131_s22 = sshll.u32 %s774_s21, 4  ;;  %s845_s22 = int_to_ptr.vmem [resolvable:$true] %s131_s22 }
   0xe   : > { %s857_s24 = sadd.s32 1, %s772_s15   ;;  %s27_s25 = sadd.s32 1, %s768_s14 }
   0xf   : > { %s1038_s20 = scalar_select %p841_p8, 1, 0 }
  0x10   : > { %p579_p9 = pneg %p841_p8  ;;  %s24_s26 = ssub.s32 %s772_s15, %s857_s24 }
  0x11   : > { %s644_s29 = scalar_lea.hbm %s1030_s1, 1024 }
  0x12   : > { %p852_p11 = pnand %p579_p9, %p1033_p1  ;;  %p645_p12 = scmp.ne.s32.totalorder %s1030_s1, %s644_s29 }
  0x13   : > { %p651_p5 = scmp.lt.u32.totalorder %s644_s29, %s1030_s1 }
  0x14   : > { %p646_p13 = pneg %p852_p11 }
  0x16   : > { %p647_p0 = pnand %p646_p13, %p645_p12 }
  0x18   : > { %p648_p3 = pneg %p647_p0 }
  0x1a   : > { %p653_p7 = pnand %p651_p5, %p648_p3 }
  0x1c   : > { %656 = shalt.err (!%p653_p7)
}
  0x1d   : > { %s657_s7 = scalar_lea.vmem %s845_s22, 1024  ;;  %p665_p2 = scmp.lt.s32.totalorder %s845_s22, %s845_s22 }
  0x1e   : > { %p658_p9 = scmp.ne.s32.totalorder %s845_s22, %s657_s7  ;;  %p666_p6 = scmp.lt.s32.totalorder %s657_s7, %s657_s7 }
  0x20   : > { %p660_p10 = pnand %p658_p9, %p646_p13  ;;  %p667_p4 = por %p666_p6, %p665_p2 }
  0x22   : > { %p661_p1 = pneg %p660_p10 }
  0x24   : > { %p668_p8 = pnand %p667_p4, %p661_p1 }
  0x26   : > { %671 = shalt.err (!%p668_p8)
}
  0x27   : > { %s775_s8 = smov 64   ;;  %s776_s9 = smov 4  }
  0x28   : > { %582 = dma.hbm_to_vmem [thread:$0]  (!%p852_p11), %s1030_s1, 1024, %s845_s22, [#allocation6], %s775_s8, %s775_s8, %s776_s9  }
  0x29   : > { %p25_p1 = scmp.eq.s32.totalorder %s24_s26, 0  ;;  %p34_p2 = scmp.ne.s32.totalorder %s768_s14, %s764_s13 }
  0x2a   : > { %p35_p4 = scmp.eq.s32.totalorder %s772_s15, 0  ;;  %p592_p6 = scmp.lt.s32.totalorder %s772_s15, 2 }
  0x2b   : > { %s891_s17 = scalar_select %p25_p1, %s768_s14, %s27_s25  }
  0x2c   : > { %p36_p8 = por %p35_p4, %p34_p2  ;;  %p1040_p10 = scmp.eq.s32.totalorder %s822_s16, 1 }
  0x2d   : > { %s148_s23 = sand.u32 1, %s768_s14   ;;  %s517_s27 = sshll.u32 %s772_s15, 9 }
  0x2e   : > { %p895_p12 = por %p1040_p10, %p34_p2  ;;  %s492_s28 = sshll.u32 %s148_s23, 5 }
  0x2f   : > { %s904_s4 = scalar_lea.hbm %s1029_s0, %s517_s27  ;;  %s152_s22 = scalar_lea.vmem [#allocation2], %s492_s28 }
  0x30   : > { %s159_s25 = sshll.u32 %s152_s22, 4  ;;  %p906_p11 = pnand %p592_p6, %p36_p8  ;;  %s910_s25 = int_to_ptr.vmem [resolvable:$true] %s159_s25 }
  0x31   : > { %s912_s5 = scalar_lea.sflag [#allocation3], %s148_s23  ;;  %s672_s6 = scalar_lea.hbm %s904_s4, 512 }
  0x32   : > { %p673_p13 = scmp.ne.s32.totalorder %s904_s4, %s672_s6  ;;  %p674_p0 = pneg %p906_p11 }
  0x33   : > { %s677_s11 = scalar_lea.hbm %s1029_s0, 1024  ;;  %p678_p7 = scmp.lt.u32.totalorder %s904_s4, %s1029_s0 }
  0x34   : > { %p675_p3 = pnand %p674_p0, %p673_p13  ;;  %p679_p9 = scmp.lt.u32.totalorder %s677_s11, %s672_s6 }
  0x35   : > { %p681_p2 = scmp.lt.u32.totalorder %s672_s6, %s904_s4 }
  0x36   : > { %p676_p5 = pneg %p675_p3  ;;  %p680_p1 = por %p679_p9, %p678_p7 }
  0x38   : > { %p682_p4 = por %p681_p2, %p680_p1 }
  0x3a   : > { %p683_p6 = pnand %p682_p4, %p676_p5 }
  0x3c   : > { %686 = shalt.err (!%p683_p6)
}
  0x3d   : > { %s687_s23 = scalar_lea.vmem %s910_s25, 512  ;;  %s777_s29 = smov [#allocation2]  }
  0x3e   : > { %p688_p8 = scmp.ne.s32.totalorder %s910_s25, %s687_s23  ;;  %s692_s30 = sshll.u32 %s777_s29, 4  ;;  %s693_s30 = int_to_ptr.vmem [resolvable:$false] %s692_s30 }
  0x3f   : > { %s694_s22 = scalar_lea.vmem %s693_s30, 1024  ;;  %p695_p3 = scmp.lt.s32.totalorder %s910_s25, %s693_s30 }
  0x40   : > { %p690_p10 = pnand %p688_p8, %p674_p0  ;;  %p696_p7 = scmp.lt.s32.totalorder %s694_s22, %s687_s23 }
  0x42   : > { %p691_p13 = pneg %p690_p10  ;;  %p697_p9 = por %p696_p7, %p695_p3 }
  0x44   : > { %p698_p1 = pnand %p697_p9, %p691_p13 }
  0x46   : > { %701 = shalt.err (!%p698_p1)
}
  0x47   : > { %586 = dma.hbm_to_vmem [thread:$0]  (!%p906_p11), %s904_s4, 512, %s910_s25, %s912_s5, %s775_s8, %s775_s8, %s776_s9  }
  0x48   : > { %p1043_p0 = scmp.ne.s32.totalorder %s1038_s20, 0 }
  0x49   : > { %s946_s6 = sand.u32 (!%p1043_p0), 1, %s764_s13   ;;  %p1044_p5 = scmp.ne.s32.totalorder (!%p1043_p0), %s1036_s18, 0 }
  0x4a   : > { %171 = sbr.rel (%p1043_p0) target bundleno = 352 (0x160), region = 32  ;;  %s496_s7 = sshll.u32 (!%p1043_p0), %s946_s6, 5 }
  0x4b   : > { %s174_s10 = scalar_lea.sflag (!%p1043_p0), [#allocation3], %s946_s6  ;;  %s950_s11 = scalar_lea.vmem (!%p1043_p0), [#allocation2], %s496_s7 }
  0x51   : > { %747 = dma.done.wait (%p1044_p5), %s174_s10, 512  }
  0x52   : > { %749 = vsyncadd (%p1044_p5), %s174_s10, 4294966784  ;;  %p1045_p11 = scmp.eq.s32.totalorder %s822_s16, 0 }
  0x54   : > { %751 = dma.done.wait (%p1045_p11), [#allocation6], 1024   ;;  %p1046_p2 = pmov %p1045_p11 }
  0x55   : > { %v632_v0 = vld [vmem:[#allocation5] sm:$0xff]   ;;  %v633_v1 = vld [vmem:[#allocation5 + $0x8] sm:$0xff]   ;;  %v634_v2 = vld [vmem:[#allocation5 + $0x10] sm:$0xff]   ;;  %s498_s18 = sshll.u32 %s946_s6, 6  ;;  %s518_s25 = sshll.u32 %s822_s16, 10 }
  0x56   : > { %753 = vsyncadd (%p1046_p2), [#allocation6], 4294966272  ;;  %531 = vmatprep.subr.bf16.mxu0 %v632_v0  ;;  %555 = vmatprep.subr.bf16.mxu1 %v632_v0  ;;  %v635_v3 = vld [vmem:[#allocation5 + $0x18] sm:$0xff]   ;;  %v640_v4 = vld [vmem:[%s950_s11] sm:$0xff]   ;;  %s968_s9 = scalar_lea.vmem [#allocation7], %s498_s18  ;;  %s979_s5 = scalar_lea.hbm %s1032_s3, %s518_s25 }
  0x57   : > { %532 = vmatpush3.bf16.msra.mxu0 %v632_v0  ;;  %563 = vmatpush3.bf16.msra.mxu1 %v632_v0  ;;  %v641_v5 = vld [vmem:[%s950_s11 + $0x10] sm:$0xff]   ;;  %v636_v6 = vld [vmem:[#allocation5 + $0x20] sm:$0xff]   ;;  %v637_v7 = vld [vmem:[#allocation5 + $0x28] sm:$0xff]   ;;  %s405_s4 = sshll.u32 %s968_s9, 4  ;;  %s392_s27 = scalar_lea.sflag [#allocation4], %s946_s6  ;;  %s972_s4 = int_to_ptr.vmem [resolvable:$true] %s405_s4 }
  0x58   : > { %533 = vmatprep.subr.bf16.mxu0 %v633_v1  ;;  %556 = vmatprep.subr.bf16.mxu1 %v633_v1  ;;  %v638_v8 = vld [vmem:[#allocation5 + $0x30] sm:$0xff]   ;;  %v639_v9 = vld [vmem:[#allocation5 + $0x38] sm:$0xff]   ;;  %v642_v10 = vld [vmem:[%s950_s11 + $0x8] sm:$0xff]   ;;  %s702_s28 = scalar_lea.vmem %s972_s4, 1024  ;;  %s778_s23 = smov [#allocation7]  }
  0x59   : > { %547 = vmatprep.mubr.bf16.mxu0 %v640_v4  ;;  %551 = vmatprep.mubr.bf16.mxu1 %v641_v5  ;;  %v643_v11 = vld [vmem:[%s950_s11 + $0x18] sm:$0xff]   ;;  %v499_v12 = vld [vmem:[%s1031_s2] ss:$0 sm:$0xff]  ;;  %p703_p4 = scmp.ne.s32.totalorder %s972_s4, %s702_s28  ;;  %s706_s29 = sshll.u32 %s778_s23, 4  ;;  %s707_s29 = int_to_ptr.vmem [resolvable:$false] %s706_s29 }
  0x5a   : > { %s708_s30 = scalar_lea.vmem %s707_s29, 2048  ;;  %p709_p10 = scmp.lt.s32.totalorder %s972_s4, %s707_s29 }
  0x5b   : > { %534 = vmatpush3.bf16.msra.mxu0 %v633_v1  ;;  %564 = vmatpush3.bf16.msra.mxu1 %v633_v1  ;;  %p704_p6 = pnand %p703_p4, %p895_p12  ;;  %p710_p13 = scmp.lt.s32.totalorder %s708_s30, %s702_s28 }
  0x5c   : > { %535 = vmatprep.subr.bf16.mxu0 %v634_v2  ;;  %557 = vmatprep.subr.bf16.mxu1 %v634_v2 }
  0x5d   : > { %p705_p8 = pneg %p704_p6  ;;  %p711_p3 = por %p710_p13, %p709_p10 }
  0x5f   : > { %536 = vmatpush3.bf16.msra.mxu0 %v634_v2  ;;  %565 = vmatpush3.bf16.msra.mxu1 %v634_v2  ;;  %p712_p7 = pnand %p711_p3, %p705_p8 }
  0x60   : > { %537 = vmatprep.subr.bf16.mxu0 %v635_v3  ;;  %558 = vmatprep.subr.bf16.mxu1 %v635_v3 }
  0x63   : > { %538 = vmatpush3.bf16.msra.mxu0 %v635_v3  ;;  %566 = vmatpush3.bf16.msra.mxu1 %v635_v3 }
  0x64   : > { %539 = vmatprep.subr.bf16.mxu0 %v636_v6  ;;  %559 = vmatprep.subr.bf16.mxu1 %v636_v6 }
  0x67   : > { %540 = vmatpush3.bf16.msra.mxu0 %v636_v6  ;;  %567 = vmatpush3.bf16.msra.mxu1 %v636_v6 }
  0x68   : > { %541 = vmatprep.subr.bf16.mxu0 %v637_v7  ;;  %560 = vmatprep.subr.bf16.mxu1 %v637_v7 }
  0x6b   : > { %542 = vmatpush3.bf16.msra.mxu0 %v637_v7  ;;  %568 = vmatpush3.bf16.msra.mxu1 %v637_v7 }
  0x6c   : > { %543 = vmatprep.subr.bf16.mxu0 %v638_v8  ;;  %561 = vmatprep.subr.bf16.mxu1 %v638_v8 }
  0x6f   : > { %544 = vmatpush3.bf16.msra.mxu0 %v638_v8  ;;  %569 = vmatpush3.bf16.msra.mxu1 %v638_v8 }
  0x70   : > { %545 = vmatprep.subr.bf16.mxu0 %v639_v9  ;;  %562 = vmatprep.subr.bf16.mxu1 %v639_v9 }
  0x73   : > { %546 = vmatpush3.bf16.msra.mxu0 %v639_v9  ;;  %570 = vmatpush3.bf16.msra.mxu1 %v639_v9 }
  0x76   : > { %548 = vmatmul.mubr.bf16.vlgmr.msra.gmra.mrb[0].mxu0 %v642_v10  ;;  %552 = vmatmul.mubr.bf16.vlgmr.msra.gmra.mrb[0].mxu1 %v643_v11 }
 0x149   : > { %v549_v13 = vpop.f32.mrb[0].mxu0  ;;  %v553_v14 = vpop.f32.mrb[0].mxu1 }
 0x14a   : > { %v353_v15 = vadd.f32 %v549_v13, %v499_v12  ;;  %v369_v16 = vadd.f32 %v553_v14, %v499_v12  ;;  %v344_v17 = vpop.f32.mrb[1].mxu0  ;;  %v360_v18 = vpop.f32.mrb[1].mxu1 }
 0x14b   : > { %v345_v19 = vadd.f32 %v499_v12, %v344_v17  ;;  %v361_v20 = vadd.f32 %v499_v12, %v360_v18  ;;  %v550_v21 = vpop.f32.mrb[2].mxu0  ;;  %v554_v22 = vpop.f32.mrb[2].mxu1 }
 0x14c   : > { %v377_v23 = vmax.f32 %v353_v15, 0.0  ;;  %v381_v24 = vmax.f32 %v369_v16, 0.0  ;;  %v356_v25 = vadd.f32 %v550_v21, %v499_v12  ;;  %v372_v26 = vadd.f32 %v554_v22, %v499_v12  ;;  %v347_v27 = vpop.f32.mrb[3].mxu0  ;;  %v363_v28 = vpop.f32.mrb[3].mxu1 }
 0x14d   : > { %v375_v29 = vmax.f32 %v345_v19, 0.0  ;;  %v379_v30 = vmax.f32 %v361_v20, 0.0  ;;  %v348_v31 = vadd.f32 %v499_v12, %v347_v27  ;;  %v364_v32 = vadd.f32 %v499_v12, %v363_v28 }
 0x14e   : > { %385 = vst [vmem:[%s968_s9 + $0x10] sm:$0xff] %v377_v23  ;;  %389 = vst [vmem:[%s968_s9 + $0x30] sm:$0xff] %v381_v24  ;;  %v378_v33 = vmax.f32 %v356_v25, 0.0  ;;  %v382_v34 = vmax.f32 %v372_v26, 0.0 }
 0x14f   : > { %383 = vst [vmem:[%s968_s9] sm:$0xff] %v375_v29  ;;  %387 = vst [vmem:[%s968_s9 + $0x20] sm:$0xff] %v379_v30  ;;  %v376_v35 = vmax.f32 %v348_v31, 0.0  ;;  %v380_v36 = vmax.f32 %v364_v32, 0.0 }
 0x150   : > { %386 = vst [vmem:[%s968_s9 + $0x18] sm:$0xff] %v378_v33  ;;  %390 = vst [vmem:[%s968_s9 + $0x38] sm:$0xff] %v382_v34 }
 0x151   : > { %384 = vst [vmem:[%s968_s9 + $0x8] sm:$0xff] %v376_v35  ;;  %388 = vst [vmem:[%s968_s9 + $0x28] sm:$0xff] %v380_v36 }
 0x152   : > { %715 = shalt.err (!%p712_p7)
}
 0x153   : > { %s716_s22 = scalar_lea.hbm %s979_s5, 1024  ;;  %s720_s11 = scalar_lea.hbm %s1032_s3, 2048 }
 0x154   : > { %p717_p9 = scmp.ne.s32.totalorder %s979_s5, %s716_s22  ;;  %p721_p5 = scmp.lt.u32.totalorder %s979_s5, %s1032_s3 }
 0x155   : > { %p722_p11 = scmp.lt.u32.totalorder %s720_s11, %s716_s22  ;;  %p724_p4 = scmp.lt.u32.totalorder %s716_s22, %s979_s5 }
 0x156   : > { %p718_p1 = pnand %p717_p9, %p895_p12 }
 0x157   : > { %p723_p2 = por %p722_p11, %p721_p5 }
 0x158   : > { %p719_p0 = pneg %p718_p1 }
 0x159   : > { %p725_p6 = por %p724_p4, %p723_p2 }
 0x15b   : > { %p726_p8 = pnand %p725_p6, %p719_p0 }
 0x15d   : > { %729 = shalt.err (!%p726_p8)
}
 0x15e   : > { %s779_s8 = smov 128   ;;  %s780_s9 = smov 8  }
 0x15f   : > { %577 = dma.vmem_to_hbm [thread:$0]  (%p895_p12), %s972_s4, 1024, %s979_s5, %s392_s27, %s779_s8, %s779_s8, %s780_s9  }
 0x160 PF: > { %s420_s25 = sand.u32 1, %s760_s12   ;;  %p1047_p10 = scmp.ne.s32.totalorder %s1037_s19, 0 }
 0x161   : > { %p1048_p13 = scmp.ge.s32.totalorder %s772_s15, 2  ;;  %s421_s16 = scalar_lea.sflag [#allocation4], %s420_s25 }
 0x163   : > { %p588_p3 = pnand %p1048_p13, %p1047_p10 }
 0x165   : > { %755 = dma.done.wait (!%p588_p3), %s421_s16, 1024  }
 0x166   : > { %757 = vsyncadd (!%p588_p3), %s421_s16, 4294966272  ;;  %p17_p7 = scmp.ge.s32.totalorder %s857_s24, 4   ;;  %s1049_s12 = smov %s764_s13 }
 0x167   : > { %s1050_s13 = smov %s768_s14  ;;  %s1051_s14 = smov %s891_s17 }
 0x168   : > { %s1052_s15 = smov %s857_s24  ;;  %19 = sbr.rel (!%p17_p7) target bundleno = 6 (0x6), region = 81 }
 0x16f   :  { %426 = vsyncpa [#allocation3], 1 }
 0x170   :  { %428 = vsyncpa [#allocation3 + $0x1], 1 }
 0x171   :  { %429 = vsyncpa [#allocation6], 1 }
 0x172   :  { %430 = vsyncpa [#allocation4], 1 }
 0x173   :  { %432 = vsyncpa [#allocation4 + $0x1], 1 }

</bundles_post_ra>
